<compile_context>
chip_gen: v7x
topology: tpu7x:2x2x1
jax: 0.10.0
libtpu: 0.0.40
codegen_flags: <defaults>
</compile_context>

<pallas_src>
import functools

import jax
import jax.numpy as jnp
import numpy as np
from jax.experimental import pallas as pl
from jax.experimental.pallas import tpu as pltpu

_MIN_PALLAS_ELEMS = 2048  # below this, XLA fuses the loss for free


def _ldam_kernel(x_ref, tgt_ref, mw_ref, out_ref, *, s, n_rows, block_n, ragged):
    x = x_ref[...].astype(jnp.float32)          # [TN, C]  (cast after load)
    tgt = tgt_ref[...]                          # [TN, 1]  int32
    mw = mw_ref[...]                            # [2, C]   row0=m_list, row1=weight

    tn, c = x.shape

    # Target indicator (kept as bool; cast to f32 only for the matmul LHS).
    col = jax.lax.broadcasted_iota(jnp.int32, (tn, c), 1)
    is_tgt = col == tgt                                          # [TN, C] bool
    onehot = is_tgt.astype(jnp.float32)                          # matmul LHS

    # batch_m = m_list[target], w_i = weight[target] via one MXU contraction
    # over the class axis: [TN, C] x [2, C] -> [TN, 2].
    bm_w = jax.lax.dot_general(onehot, mw, (((1,), (1,)), ((), ())),
                               preferred_element_type=jnp.float32)
    batch_m = bm_w[:, 0:1]                                       # [TN, 1]
    w_i = bm_w[:, 1:2]                                           # [TN, 1]

    # output = where(index, x - batch_m, x); scaled log-softmax NLL at target.
    z = s * jnp.where(is_tgt, x - batch_m, x)                    # [TN, C]
    zmax = jnp.max(z, axis=1, keepdims=True)
    lse = jnp.log(jnp.sum(jnp.exp(z - zmax), axis=1, keepdims=True)) + zmax
    z_t = jnp.sum(jnp.where(is_tgt, z, 0.0), axis=1, keepdims=True)
    nll = lse - z_t                                              # [TN, 1]

    if ragged:
        # Only the [TN,1] quantities need masking; padded rows may hold stale
        # VMEM (possibly NaN/Inf), so zero nll BEFORE it multiplies w_i.
        i = pl.program_id(0)
        row = jax.lax.broadcasted_iota(jnp.int32, (tn, 1), 0) + i * block_n
        valid = row < n_rows
        nll = jnp.where(valid, nll, 0.0)
        w_i = jnp.where(valid, w_i, 0.0)

    num = jnp.sum(w_i * nll)
    den = jnp.sum(w_i)

    # Lane-dense partial result: [num, den, 0, ...] in a (1,1,128) block.
    lane = jax.lax.broadcasted_iota(jnp.int32, (1, 1, 128), 2)
    out_ref[...] = jnp.where(lane == 0, num, jnp.where(lane == 1, den, 0.0))


def _dtype_row_mult(dtype):
    """Row-tile multiple imposed by sublane packing of the input dtype."""
    itemsize = jnp.dtype(dtype).itemsize
    if itemsize >= 4:
        return 8
    if itemsize == 2:
        return 16
    return 32


def _vmem_limit_bytes():
    """Per-generation scoped VMEM limit (~60% of physical, 32..96 MiB)."""
    cap = None
    try:
        cap = getattr(pltpu.get_tpu_info(), "vmem_capacity_bytes", None)
    except Exception:
        cap = None
    if not cap:
        cap = 64 << 20  # conservative default = v7x physical VMEM per core
    return int(min(max(int(cap * 0.6), 32 << 20), 96 << 20))


def _auto_block_n(n, c, dtype, vmem_limit_bytes):
    """Largest batch tile whose true VMEM footprint fits the scoped limit.

    Per-row footprint:
      * 2x double-buffered native-dtype x block : 2 * C * itemsize
      * ~5 live [TN, C] f32 temporaries in the body
        (f32 copy of x, iota/compare, z, exp(z - zmax), onehot)
    """
    itemsize = jnp.dtype(dtype).itemsize
    mult = _dtype_row_mult(dtype)
    bytes_per_row = 2 * c * itemsize + 5 * c * 4
    budget = int(vmem_limit_bytes * 0.75)       # headroom for mw, outputs, slack
    rows = budget // max(1, bytes_per_row)
    rows = (rows // mult) * mult
    rows = max(mult, min(rows, 8192))           # big tiles amortize ~0.35us/step
    n_up = pl.cdiv(n, mult) * mult
    return max(mult, min(rows, n_up))


def ldam_loss_pallas(x, target, m_list, weight, s=30.0, block_n=None,
                     force_pallas=False):
    """x: [N, C] float, target: [N] int, m_list/weight: [C] float -> scalar f32."""
    n, c = x.shape

    # Tiny problems: a Pallas launch is pure overhead; let XLA fuse it.
    if not force_pallas and n * c < _MIN_PALLAS_ELEMS:
        return ldam_loss_ref(x, target, m_list, weight, s=s)

    vmem_limit = _vmem_limit_bytes()
    mult = _dtype_row_mult(x.dtype)
    if block_n is None:
        block_n = _auto_block_n(n, c, x.dtype, vmem_limit)
    block_n = max(mult, (int(block_n) // mult) * mult)
    grid_n = pl.cdiv(n, block_n)
    ragged = (n % block_n) != 0

    tgt2d = target.reshape(n, 1).astype(jnp.int32)
    # Lane-dense (2, C) operand: row0 = m_list, row1 = weight.
    mw = jnp.stack([m_list.astype(jnp.float32),
                    weight.astype(jnp.float32)], axis=0)

    kernel = functools.partial(_ldam_kernel, s=float(s), n_rows=n,
                               block_n=block_n, ragged=ragged)

    partials = pl.pallas_call(
        kernel,
        out_shape=jax.ShapeDtypeStruct((grid_n, 1, 128), jnp.float32),
        grid_spec=pltpu.PrefetchScalarGridSpec(
            num_scalar_prefetch=0,
            grid=(grid_n,),
            in_specs=[
                pl.BlockSpec((block_n, c), lambda i: (i, 0)),   # x tile (native dtype)
                pl.BlockSpec((block_n, 1), lambda i: (i, 0)),   # target tile
                pl.BlockSpec((2, c), lambda i: (0, 0)),         # [m_list ; weight]
            ],
            out_specs=pl.BlockSpec((1, 1, 128), lambda i: (i, 0, 0)),
        ),
        compiler_params=pltpu.CompilerParams(
            dimension_semantics=("parallel",),       # independent per-tile partials
            vmem_limit_bytes=vmem_limit,
        ),
    )(x, tgt2d, mw)

    num = jnp.sum(partials[:, 0, 0])
    den = jnp.sum(partials[:, 0, 1])
    return num / den


def ldam_loss_ref(x, target, m_list, weight, s=30.0):
    """Pure-JAX reference (mirrors the PyTorch module)."""
    n, c = x.shape
    onehot = jax.nn.one_hot(target, c, dtype=jnp.float32)
    xf = x.astype(jnp.float32)
    batch_m = (onehot * m_list[None, :].astype(jnp.float32)).sum(axis=1, keepdims=True)
    output = jnp.where(onehot > 0, xf - batch_m, xf)
    z = s * output
    logp = jax.nn.log_softmax(z, axis=1)
    nll = -(onehot * logp).sum(axis=1)
    w_i = weight.astype(jnp.float32)[target]
    return jnp.sum(w_i * nll) / jnp.sum(w_i)


if __name__ == "__main__":
    key = jax.random.PRNGKey(0)
    kx, kt = jax.random.split(key)

    N, C = 50, 128         # small, but enough for a multi-tile grid + ragged tail
    max_m, s = 0.5, 30.0

    # Deterministic "class count list" -> LDAM margins (same math as __init__).
    cls_num_list = np.arange(10, 10 + C, dtype=np.float64) * 7.0
    m_np = 1.0 / np.sqrt(np.sqrt(cls_num_list))
    m_np = m_np * (max_m / np.max(m_np))
    m_list = jnp.asarray(m_np, dtype=jnp.float32)

    # Deterministic per-class CE weights (inverse-frequency style).
    weight = jnp.asarray(cls_num_list.sum() / cls_num_list, dtype=jnp.float32)

    x = jax.random.normal(kx, (N, C), dtype=jnp.float32)
    target = jax.random.randint(kt, (N,), 0, C, dtype=jnp.int32)

    # block_n=16 -> 4 grid steps, last tile ragged (exercises masking + partials).
    loss = ldam_loss_pallas(x, target, m_list, weight, s=s, block_n=16,
                            force_pallas=True)
    jax.block_until_ready(loss)

    loss_ref = ldam_loss_ref(x, target, m_list, weight, s=s)
    np.testing.assert_allclose(np.asarray(loss), np.asarray(loss_ref),
                               rtol=3e-5, atol=1e-5)
    print("KERNEL_OK")
</pallas_src>

<mosaic_0001>
module attributes {stable_mosaic.version = 11 : i64} {
  func.func @_ldam_kernel(%arg0: i32, %arg1: memref<16x128xf32, #tpu.memory_space<vmem>>, %arg2: memref<16x1xi32, #tpu.memory_space<vmem>>, %arg3: memref<2x128xf32, #tpu.memory_space<vmem>>, %arg4: memref<1x1x128xf32, #tpu.memory_space<vmem>>) attributes {dimension_semantics = [#tpu.dimension_semantics<parallel>], iteration_bounds = array<i64: 4>, scalar_prefetch = 0 : i64, scratch_operands = 0 : i64, tpu.core_type = #tpu.core_type<tc>, window_params = [{transform_indices = @transform_0, window_bounds = array<i64: 16, 128>}, {transform_indices = @transform_1, window_bounds = array<i64: 16, 1>}, {pipeline_mode = #tpu.pipeline_mode<synchronous>, transform_indices = @transform_2, window_bounds = array<i64: 2, 128>}, {transform_indices = @transform_3, window_bounds = array<i64: 1, 1, 128>}]} {
    %c0 = arith.constant 0 : index
    %c0_0 = arith.constant 0 : index
    %0 = vector.load %arg1[%c0, %c0_0] : memref<16x128xf32, #tpu.memory_space<vmem>>, vector<16x128xf32>
    %c0_1 = arith.constant 0 : index
    %c0_2 = arith.constant 0 : index
    %1 = vector.load %arg2[%c0_1, %c0_2] : memref<16x1xi32, #tpu.memory_space<vmem>>, vector<16x1xi32>
    %c0_3 = arith.constant 0 : index
    %c0_4 = arith.constant 0 : index
    %2 = vector.load %arg3[%c0_3, %c0_4] : memref<2x128xf32, #tpu.memory_space<vmem>>, vector<2x128xf32>
    %3 = tpu.iota {dimensions = array<i32: 1>} : vector<16x128xi32>
    %4 = vector.broadcast %1 : vector<16x1xi32> to vector<16x128xi32>
    %5 = arith.cmpi eq, %3, %4 : vector<16x128xi32>
    %6 = arith.extui %5 : vector<16x128xi1> to vector<16x128xi32>
    %7 = arith.sitofp %6 : vector<16x128xi32> to vector<16x128xf32>
    %cst = arith.constant dense<0.000000e+00> : vector<16x2xf32>
    %8 = tpu.matmul %7, %2, %cst {dimension_numbers = #tpu.dot_dimension_numbers<[1], [1], [0], [0], [0, 0, 1, 0], [], []>} : vector<16x128xf32>, vector<2x128xf32>, vector<16x2xf32> -> vector<16x2xf32>
    %9 = vector.extract_strided_slice %8 {offsets = [0, 0], sizes = [16, 1], strides = [1, 1]} : vector<16x2xf32> to vector<16x1xf32>
    %10 = vector.extract_strided_slice %8 {offsets = [0, 1], sizes = [16, 1], strides = [1, 1]} : vector<16x2xf32> to vector<16x1xf32>
    %11 = vector.broadcast %9 : vector<16x1xf32> to vector<16x128xf32>
    %12 = arith.subf %0, %11 : vector<16x128xf32>
    %13 = arith.select %5, %12, %0 : vector<16x128xi1>, vector<16x128xf32>
    %cst_5 = arith.constant 3.000000e+01 : f32
    %14 = vector.broadcast %cst_5 : f32 to vector<16x128xf32>
    %15 = arith.mulf %14, %13 : vector<16x128xf32>
    %cst_6 = arith.constant dense<0xFF800000> : vector<16xf32>
    %16 = vector.multi_reduction <maximumf>, %15, %cst_6 [1] : vector<16x128xf32> to vector<16xf32>
    %17 = vector.shape_cast %16 : vector<16xf32> to vector<16x1xf32>
    %18 = vector.broadcast %17 : vector<16x1xf32> to vector<16x128xf32>
    %19 = arith.subf %15, %18 : vector<16x128xf32>
    %20 = math.exp %19 : vector<16x128xf32>
    %cst_7 = arith.constant dense<0.000000e+00> : vector<16xf32>
    %21 = vector.multi_reduction <add>, %20, %cst_7 [1] : vector<16x128xf32> to vector<16xf32>
    %22 = vector.shape_cast %21 : vector<16xf32> to vector<16x1xf32>
    %23 = math.log %22 : vector<16x1xf32>
    %24 = arith.addf %23, %17 : vector<16x1xf32>
    %cst_8 = arith.constant 0.000000e+00 : f32
    %25 = vector.broadcast %cst_8 : f32 to vector<16x128xf32>
    %26 = arith.select %5, %15, %25 : vector<16x128xi1>, vector<16x128xf32>
    %cst_9 = arith.constant dense<0.000000e+00> : vector<16xf32>
    %27 = vector.multi_reduction <add>, %26, %cst_9 [1] : vector<16x128xf32> to vector<16xf32>
    %28 = vector.shape_cast %27 : vector<16xf32> to vector<16x1xf32>
    %29 = arith.subf %24, %28 : vector<16x1xf32>
    %30 = tpu.iota {dimensions = array<i32: 0>} : vector<16x1xi32>
    %c16_i32 = arith.constant 16 : i32
    %31 = arith.muli %arg0, %c16_i32 : i32
    %32 = vector.broadcast %31 : i32 to vector<16x1xi32>
    %33 = arith.addi %30, %32 : vector<16x1xi32>
    %c50_i32 = arith.constant 50 : i32
    %34 = vector.broadcast %c50_i32 : i32 to vector<16x1xi32>
    %35 = arith.cmpi slt, %33, %34 : vector<16x1xi32>
    %cst_10 = arith.constant 0.000000e+00 : f32
    %36 = vector.broadcast %cst_10 : f32 to vector<16x1xf32>
    %37 = arith.select %35, %29, %36 : vector<16x1xi1>, vector<16x1xf32>
    %cst_11 = arith.constant 0.000000e+00 : f32
    %38 = vector.broadcast %cst_11 : f32 to vector<16x1xf32>
    %39 = arith.select %35, %10, %38 : vector<16x1xi1>, vector<16x1xf32>
    %40 = arith.mulf %39, %37 : vector<16x1xf32>
    %41 = vector.shape_cast %40 : vector<16x1xf32> to vector<1x16x1xf32>
    %cst_12 = arith.constant dense<0.000000e+00> : vector<1xf32>
    %42 = vector.multi_reduction <add>, %41, %cst_12 [1, 2] : vector<1x16x1xf32> to vector<1xf32>
    %43 = vector.shape_cast %42 : vector<1xf32> to vector<1x1x1xf32>
    %44 = vector.extract %43[0, 0, 0] : f32 from vector<1x1x1xf32>
    %45 = vector.shape_cast %39 : vector<16x1xf32> to vector<1x16x1xf32>
    %cst_13 = arith.constant dense<0.000000e+00> : vector<1xf32>
    %46 = vector.multi_reduction <add>, %45, %cst_13 [1, 2] : vector<1x16x1xf32> to vector<1xf32>
    %47 = vector.shape_cast %46 : vector<1xf32> to vector<1x1x1xf32>
    %48 = vector.extract %47[0, 0, 0] : f32 from vector<1x1x1xf32>
    %49 = tpu.iota {dimensions = array<i32: 2>} : vector<1x1x128xi32>
    %c0_i32 = arith.constant 0 : i32
    %50 = vector.broadcast %c0_i32 : i32 to vector<1x1x128xi32>
    %51 = arith.cmpi eq, %49, %50 : vector<1x1x128xi32>
    %c1_i32 = arith.constant 1 : i32
    %52 = vector.broadcast %c1_i32 : i32 to vector<1x1x128xi32>
    %53 = arith.cmpi eq, %49, %52 : vector<1x1x128xi32>
    %cst_14 = arith.constant 0.000000e+00 : f32
    %54 = vector.broadcast %48 : f32 to vector<1x1x128xf32>
    %55 = vector.broadcast %cst_14 : f32 to vector<1x1x128xf32>
    %56 = arith.select %53, %54, %55 : vector<1x1x128xi1>, vector<1x1x128xf32>
    %57 = vector.broadcast %44 : f32 to vector<1x1x128xf32>
    %58 = arith.select %51, %57, %56 : vector<1x1x128xi1>, vector<1x1x128xf32>
    %c0_15 = arith.constant 0 : index
    %c0_16 = arith.constant 0 : index
    %c0_17 = arith.constant 0 : index
    %59 = vector.load %arg4[%c0_15, %c0_16, %c0_17] : memref<1x1x128xf32, #tpu.memory_space<vmem>>, vector<1x1x128xf32>
    tpu.vector_store %arg4[%c0_15, %c0_16, %c0_17], %58 {strides = array<i32>} : memref<1x1x128xf32, #tpu.memory_space<vmem>>, vector<1x1x128xf32>,
    return
  }
  func.func @transform_0(%arg0: i32) -> (i32, i32) {
    %c0_i32 = arith.constant 0 : i32
    %c0_i32_0 = arith.constant 0 : i32
    return %arg0, %c0_i32 : i32, i32
  }
  func.func @transform_1(%arg0: i32) -> (i32, i32) {
    %c0_i32 = arith.constant 0 : i32
    %c0_i32_0 = arith.constant 0 : i32
    return %arg0, %c0_i32 : i32, i32
  }
  func.func @transform_2(%arg0: i32) -> (i32, i32) {
    %c0_i32 = arith.constant 0 : i32
    %c0_i32_0 = arith.constant 0 : i32
    %c0_i32_1 = arith.constant 0 : i32
    return %c0_i32, %c0_i32_0 : i32, i32
  }
  func.func @transform_3(%arg0: i32) -> (i32, i32, i32) {
    %c0_i32 = arith.constant 0 : i32
    %c0_i32_0 = arith.constant 0 : i32
    %c0_i32_1 = arith.constant 0 : i32
    return %arg0, %c0_i32, %c0_i32_0 : i32, i32, i32
  }
}

</mosaic_0001>

<bundles_post_ra>
// kernel: tpu_custom_call.1
= control target key start
LH: loop header
LB: loop body
LE: loop exit
PB: predicated region body
PF: predicated region fallthrough
CT: control target
= control target key end

     0   :  { %8 = vsyncpa [#allocation3], 0  ;;  %s823_s0 = inlined_call_operand.vmem [shape: f32[50,128], index: 0, kind: input, shape index: {}]   ;;  %s824_s1 = inlined_call_operand.vmem [shape: s32[50,1], index: 1, kind: input, shape index: {}]   ;;  %s825_s2 = inlined_call_operand.vmem [shape: f32[2,128], index: 2, kind: input, shape index: {}]   ;;  %s826_s3 = inlined_call_operand.hbm [shape: f32[4,1,128], index: 3, kind: output, shape index: {}]  }
   0x1   :  { %10 = vsyncpa [#allocation3 + $0x1], 0  ;;  %s681_s12 = smov 0   ;;  %s683_s13 = smov 0  }
   0x2   :  { %s685_s14 = smov 0   ;;  %s687_s15 = smov 0  }
   0x3 LB: > { %s702_s16 = sadd.s32 4294967295, %s655_s15   ;;  %s513_s17 = sadd.s32 4294967294, %s655_s15   ;;  %s655_s15 = sphi %s687_s15, %s832_s15   ;;  %s651_s14 = sphi %s685_s14, %s831_s14   ;;  %s647_s13 = sphi %s683_s13, %s830_s13   ;;  %s643_s12 = sphi %s681_s12, %s829_s12  }
   0x4   : > { %s706_s18 = sadd.s32 1, %s655_s15   ;;  %s96_s19 = sadd.s32 1, %s651_s14 }
   0x5   : > { %s93_s20 = ssub.s32 %s655_s15, %s706_s18  ;;  %p106_p0 = scmp.ne.s32.totalorder %s651_s14, %s647_s13 }
   0x6   : > { %p94_p1 = scmp.eq.s32.totalorder %s93_s20, 0  ;;  %p107_p2 = scmp.eq.s32.totalorder %s702_s16, 3 }
   0x7   : > { %p112_p3 = scmp.ne.s32.totalorder %s647_s13, %s643_s12  ;;  %p113_p4 = scmp.eq.s32.totalorder %s513_s17, 3 }
   0x8   : > { %s717_s21 = scalar_select %p94_p1, %s651_s14, %s96_s19  }
   0x9   : > { %p719_p5 = por %p107_p2, %p106_p0  ;;  %p723_p6 = por %p113_p4, %p112_p3 }
   0xa   : > { %p516_p7 = scmp.ge.s32.totalorder %s655_s15, 1  ;;  %p168_p8 = scmp.lt.s32.totalorder %s655_s15, 5 }
   0xc   : > { %p169_p9 = pnand %p516_p7, %p168_p8 }
   0xd   : > { %s517_s24 = sshll.u32 (!%p169_p9), %s702_s16, 1  ;;  %v657_v0 = vmov (!%p169_p9), 0   ;;  %v236_v2 = vld [vmem:[%s825_s2] sm:$0x3] (!%p169_p9)  ;;  %v237_v4 = vlaneseq (!%p169_p9)  ;;  %v658_v7 = vmov (!%p169_p9), 1.0   ;;  %s525_s4 = sshll.u32 (!%p169_p9), %s702_s16, 4 }
   0xe   : > { %172 = sbr.rel (%p169_p9) target bundleno = 1167 (0x48f), region = 32  ;;  %583 = vset.pattern.permute.xlu0 (!%p169_p9), %v657_v0  ;;  %p209_p10 = scmp.lt.s32.totalorder (!%p169_p9), %s517_s24, 6  ;;  %584 = vset.pattern.permute.xlu1 (!%p169_p9), %v657_v0  ;;  %v374_v11 = vstv (!%p169_p9), %s525_s4  ;;  %vm393_vm4 = vcmask (!%p169_p9), 7168  }
   0xf   : > { %532 = vmatprep.subr.mxu0 (!%p169_p9), %v236_v2  ;;  %v741_v5 = vand.u32 (!%p169_p9), 127, %v237_v4  ;;  %v371_v9 = vshrl.u32 (!%p169_p9), %v237_v4, 7  ;;  %s659_s8 = smov (!%p169_p9), 127   ;;  %s202_s9 = sand.u32 (!%p169_p9), 1, %s647_s13  }
  0x10   : > { %533 = vmatpush3.xpose.msra.mxu0 (!%p169_p9), %v236_v2  ;;  %s203_s11 = scalar_lea.vmem (!%p169_p9), [#allocation2], %s202_s9  ;;  %s434_s26 = scalar_lea.sflag (!%p169_p9), [#allocation3], %s202_s9 }
  0x11   : > { %v372_v10 = vadd.s32 (!%p169_p9), 8, %v371_v9  ;;  %v375_v27 = vadd.s32 (!%p169_p9), %v374_v11, %v371_v9  ;;  %vm427_vm5 = vcmp.eq.s32.totalorder (!%p169_p9), %v741_v5, 1  ;;  %s446_s17 = sshll.u32 (!%p169_p9), %s203_s11, 4  ;;  %vm426_vm6 = vcmp.eq.s32.totalorder (!%p169_p9), %v741_v5, 0  ;;  %s783_s17 = int_to_ptr.vmem [resolvable:$true] %s446_s17 }
  0x12   : > { %s593_s27 = scalar_lea.vmem (!%p169_p9), %s783_s17, 16 }
  0x13   : > { %v376_v12 = vadd.s32 (!%p169_p9), %v374_v11, %v372_v10  ;;  %vm377_vm3 = vcmp.lt.s32.totalorder (!%p169_p9), %v375_v27, 50  ;;  %p594_p11 = scmp.ne.s32.totalorder (!%p169_p9), %s783_s17, %s593_s27 }
  0x15   : > { %s834_s24 = smov (!%p209_p10, %s517_s24), 6  ;;  %vm378_vm2 = vcmp.lt.s32.totalorder %v376_v12, 50  ;;  %p595_p12 = pnand %p594_p11, %p719_p5 }
  0x16   : > { %s518_s25 = sshll.u32 %s834_s24, 3 }
  0x17   : > { %s226_s28 = scalar_lea.vmem %s824_s1, %s518_s25  ;;  %s212_s7 = scalar_lea.vmem %s823_s0, %s518_s25 }
  0x18   : > { %v234_v1 = vld [vmem:[%s226_s28] sm:$0xff]  ;;  %v235_v3 = vld [vmem:[%s226_s28 + $0x8] sm:$0xff]  ;;  %s781_s25 = scalar_lea.hbm %s826_s3, %s525_s4  ;;  %p596_p13 = pneg %p595_p12 }
  0x19   : > { %240 = vperm.xlu0 %583, %v234_v1   ;;  %v232_v16 = vld [vmem:[%s212_s7] sm:$0xff]  ;;  %v233_v19 = vld [vmem:[%s212_s7 + $0x8] sm:$0xff]  ;;  %s660_s28 = smov [#allocation2]  }
  0x1a   : > { %s597_s16 = sshll.u32 %s660_s28, 4  ;;  %s598_s16 = int_to_ptr.vmem [resolvable:$false] %s597_s16 }
  0x1b   : > { %s599_s29 = scalar_lea.vmem %s598_s16, 32  ;;  %p600_p0 = scmp.lt.s32.totalorder %s783_s17, %s598_s16 }
  0x1c   : > { %p601_p1 = scmp.lt.s32.totalorder %s599_s29, %s593_s27 }
  0x1d   : > { %243 = vperm.xlu0 %583, %v235_v3  }
  0x1e   : > { %p602_p2 = por %p601_p1, %p600_p0 }
  0x20   : > { %p603_p3 = pnand %p602_p2, %p596_p13 }
  0x98   : > { %v241_v6 = vpop.permute.xlu0 %240 }
  0x99   : > { %vm245_vm0 = vcmp.eq.s32.totalorder %v741_v5, %v241_v6 }
  0x9a   : > { %534 = vmatprep.mubr.msk.f32.mxu0 %vm245_vm0, %v658_v7 }
  0x9c   : > { %v244_v8 = vpop.permute.xlu0 %243 }
  0x9d   : > { %vm246_vm1 = vcmp.eq.s32.totalorder %v741_v5, %v244_v8 }
  0x9e   : > { %535 = vmatmul.mubr.msk.f32.vlgmr.msra.gmra.mrb[0].mxu0 %vm246_vm1, %v658_v7 }
 0x171   : > { %v536_v13 = vpop.f32.mrb[0].mxu0 }
 0x172   : > { %v382_v14 = vsel %vm378_vm2, %v536_v13, 0.0  ;;  %v317_v15 = vpop.f32.mrb[1].mxu0 }
 0x173   : > { %328 = vperm.xlu1 %584, %v317_v15   ;;  %v381_v28 = vsel %vm377_vm3, %v317_v15, 0.0 }
 0x177   : > { %333 = vperm.xlu1 %584, %v536_v13  }
 0x1f2   : > { %v329_v17 = vpop.permute.xlu1 %328 }
 0x1f3   : > { %v336_v18 = vsub.f32 %v232_v16, %v329_v17 }
 0x1f5   : > { %v338_v20 = vsel %vm245_vm0, %v336_v18, %v232_v16 }
 0x1f6   : > { %v334_v21 = vpop.permute.xlu1 %333  ;;  %v340_v22 = vmul.f32 30.0, %v338_v20 }
 0x1f7   : > { %v337_v23 = vsub.f32 %v233_v19, %v334_v21 }
 0x1f8   : > { %342 = vmax.xlane.f32.xlu0 %v340_v22  ;;  %v362_v26 = vsel %vm245_vm0, %v340_v22, 0.0 }
 0x1f9   : > { %v339_v24 = vsel %vm246_vm1, %v337_v23, %v233_v19 }
 0x1fa   : > { %v341_v25 = vmul.f32 30.0, %v339_v24 }
 0x1fc   : > { %344 = vmax.xlane.f32.xlu1 %v341_v25  ;;  %v363_v37 = vsel %vm246_vm1, %v341_v25, 0.0 }
 0x200   : > { %364 = vadd.xlane.f32.xlu1 %v362_v26 }
 0x211   : > { %408 = vrot.lane.b32.xlu1 %v381_v28, %s659_s8 }
 0x285   : > { %v343_v29 = vpop.xlane.xlu0 %342 }
 0x286   : > { %v346_v30 = vsub.f32 %v340_v22, %v343_v29 }
 0x288   : > { %v348_v31 = vmul.f32 1.442695, %v346_v30 }
 0x289   : > { %v345_v32 = vpop.xlane.xlu1 %344 }
 0x28a   : > { %585 = vpow2.f32 %v348_v31  ;;  %v347_v33 = vsub.f32 %v341_v25, %v345_v32 }
 0x28c   : > { %v350_v34 = vmul.f32 1.442695, %v347_v33 }
 0x28d   : > { %v365_v44 = vpop.xlane.xlu1 %364 }
 0x28e   : > { %587 = vpow2.f32 %v350_v34 }
 0x291   : > { %v409_v54 = vpop.permute.xlu1 %408 }
 0x292   : > { %v414_v58 = vsel %vm393_vm4, %v409_v54, 0.0 }
 0x294   : > { %v586_v35 = vpop.eup %585 }
 0x295   : > { %352 = vadd.xlane.f32.xlu0 %v586_v35 }
 0x298   : > { %v588_v36 = vpop.eup %587 }
 0x299   : > { %354 = vadd.xlane.f32.xlu0 %v588_v36 }
 0x29d   : > { %366 = vadd.xlane.f32.xlu0 %v363_v37 }
 0x322   : > { %v353_v38 = vpop.xlane.xlu0 %352 }
 0x323   : > { %589 = vlog2.f32 %v353_v38 }
 0x326   : > { %v355_v39 = vpop.xlane.xlu0 %354 }
 0x327   : > { %591 = vlog2.f32 %v355_v39 }
 0x32a   : > { %v367_v49 = vpop.xlane.xlu0 %366 }
 0x32d   : > { %v590_v40 = vpop.eup %589 }
 0x32e   : > { %v357_v41 = vmul.f32 0.6931472, %v590_v40 }
 0x330   : > { %v360_v42 = vadd.f32 %v357_v41, %v343_v29 }
 0x331   : > { %v592_v43 = vpop.eup %591 }
 0x332   : > { %v359_v45 = vmul.f32 0.6931472, %v592_v43  ;;  %v368_v46 = vsub.f32 %v360_v42, %v365_v44 }
 0x334   : > { %v361_v47 = vadd.f32 %v359_v45, %v345_v32  ;;  %v379_v48 = vsel %vm377_vm3, %v368_v46, 0.0 }
 0x335   : > { %v383_v50 = vmul.f32 %v381_v28, %v379_v48 }
 0x336   : > { %v369_v51 = vsub.f32 %v361_v47, %v367_v49 }
 0x337   : > { %387 = vrot.lane.b32.xlu1 %v383_v50, %s659_s8 }
 0x338   : > { %v380_v52 = vsel %vm378_vm2, %v369_v51, 0.0 }
 0x339   : > { %v384_v53 = vmul.f32 %v382_v14, %v380_v52 }
 0x33b   : > { %389 = vrot.lane.b32.xlu0 %v384_v53, %s659_s8  ;;  %410 = vrot.lane.b32.xlu1 %v382_v14, %s659_s8 }
 0x3a9   : > { %v388_v55 = vpop.permute.xlu1 %387 }
 0x3aa   : > { %v394_v59 = vsel %vm393_vm4, %v388_v55, 0.0 }
 0x3ad   : > { %v390_v56 = vpop.permute.xlu0 %389  ;;  %v411_v57 = vpop.permute.xlu1 %410 }
 0x3ae   : > { %v395_v60 = vsel %vm393_vm4, %v390_v56, 0.0  ;;  %v415_v61 = vsel %vm393_vm4, %v411_v57, 0.0 }
 0x3af   : > { %v396_v62 = vadd.f32 %v395_v60, %v394_v59  ;;  %v416_v63 = vadd.f32 %v415_v61, %v414_v58 }
 0x3b1   : > { %397 = vadd.xlane.f32.xlu0 %v396_v62  ;;  %417 = vadd.xlane.f32.xlu1 %v416_v63 }
 0x43e   : > { %v398_v0 = vpop.xlane.xlu0 %397  ;;  %v418_v1 = vpop.xlane.xlu1 %417 }
 0x43f   : > { %v399_v2 = vrot.slane %v398_v0, 4  ;;  %v419_v3 = vrot.slane %v418_v1, 4 }
 0x441   : > { %v400_v4 = vadd.f32 %v399_v2, %v398_v0  ;;  %v420_v6 = vadd.f32 %v419_v3, %v418_v1 }
 0x443   : > { %v401_v7 = vrot.slane %v400_v4, 2  ;;  %v421_v8 = vrot.slane %v420_v6, 2 }
 0x445   : > { %v422_v9 = vadd.f32 %v421_v8, %v420_v6  ;;  %v402_v10 = vadd.f32 %v401_v7, %v400_v4 }
 0x447   : > { %v403_v11 = vrot.slane %v402_v10, 1  ;;  %v423_v12 = vrot.slane %v422_v9, 1 }
 0x449   : > { %v404_v13 = vadd.f32 %v403_v11, %v402_v10  ;;  %v424_v14 = vadd.f32 %v423_v12, %v422_v9 }
 0x44b   : > { %537 = vpush %v404_v13 }
 0x44c   : > { %539 = vpush %v424_v14 }
 0x47c   : > { %s538_s10 = spop %537 }
 0x47d   : > { %v430_v15 = vstv %s538_s10  ;;  %s540_s19 = spop %539 }
 0x47e   : > { %v428_v16 = vstv %s540_s19 }
 0x47f   : > { %v429_v17 = vsel %vm427_vm5, %v428_v16, 0.0 }
 0x480   : > { %v431_v18 = vsel %vm426_vm6, %v430_v15, %v429_v17 }
 0x481   : > { %432 = vst [vmem:[%s203_s11] sm:$0x1] %v431_v18 }
 0x482   : > { %606 = shalt.err (!%p603_p3)
}
 0x483   : > { %s607_s30 = scalar_lea.hbm %s781_s25, 16  ;;  %s611_s6 = scalar_lea.hbm %s826_s3, 64 }
 0x484   : > { %p608_p4 = scmp.ne.s32.totalorder %s781_s25, %s607_s30  ;;  %p612_p9 = scmp.lt.u32.totalorder %s781_s25, %s826_s3 }
 0x485   : > { %p613_p10 = scmp.lt.u32.totalorder %s611_s6, %s607_s30  ;;  %p615_p12 = scmp.lt.u32.totalorder %s607_s30, %s781_s25 }
 0x486   : > { %p609_p7 = pnand %p608_p4, %p719_p5 }
 0x487   : > { %p614_p11 = por %p613_p10, %p612_p9 }
 0x488   : > { %p610_p8 = pneg %p609_p7 }
 0x489   : > { %p616_p13 = por %p615_p12, %p614_p11 }
 0x48b   : > { %p617_p0 = pnand %p616_p13, %p610_p8 }
 0x48d   : > { %620 = shalt.err (!%p617_p0)
}
 0x48e   : > { %541 = dma.vmem_to_hbm [thread:$0]  (%p719_p5), %s783_s17, 16, %s781_s25, %s434_s26  }
 0x48f PF: > { %p547_p1 = scmp.ge.s32.totalorder %s655_s15, 2  ;;  %s458_s9 = sand.u32 1, %s643_s12  }
 0x490   : > { %s459_s10 = scalar_lea.sflag [#allocation3], %s458_s9 }
 0x491   : > { %p544_p2 = pnand %p547_p1, %p723_p6 }
 0x493   : > { %638 = dma.done.wait (!%p544_p2), %s459_s10, 16  }
 0x494   : > { %640 = vsyncadd (!%p544_p2), %s459_s10, 4294967280  ;;  %p13_p3 = scmp.ge.s32.totalorder %s706_s18, 6   ;;  %s829_s12 = smov %s647_s13 }
 0x495   : > { %s830_s13 = smov %s651_s14  ;;  %s831_s14 = smov %s717_s21 }
 0x496   : > { %s832_s15 = smov %s706_s18  ;;  %15 = sbr.rel (!%p13_p3) target bundleno = 3 (0x3), region = 70 }
 0x49d   :  { %463 = vsyncpa [#allocation3], 1 }
 0x49e   :  { %465 = vsyncpa [#allocation3 + $0x1], 1 }

</bundles_post_ra>
